<compile_context>
chip_gen: v7x
topology: tpu7x:2x2x1
jax: 0.10.0
libtpu: 0.0.40
codegen_flags: <defaults>
</compile_context>

<pallas_src>
import functools
import warnings

import jax
import jax.numpy as jnp
from jax import lax
from jax.experimental import pallas as pl
from jax.experimental.pallas import tpu as pltpu

# `wav * 0 + 16385` in get_null_wav.  Exact in float32; rounds to 16384 if the
# wav dtype is bfloat16 (documented quirk — not bit-exact with torch for bf16).
NULL_WAV_VALUE = 16385.0

_SUBLANES = 8
_LANE = 128
_DEFAULT_MAX_TILE_BYTES = 4 << 20   # 4 MiB constant tile (review: 4-8 MiB)
_DMA_SLOTS = 4                      # max copies kept in flight per grid step


def _nullify_kernel(drop_ref, const_ref, wav_hbm, out_hbm, sems, *,
                    tiles_per_step, nslots):
    """Grid = (B, SPLIT).  One step nullifies `tiles_per_step` HBM tiles of
    sample b (if dropped) by DMA-ing a resident constant VMEM tile over them.

    drop_ref : (B,) int32 in SMEM — 1 => nullify sample b, 0 => keep it.
    const_ref: (8, TILE_L) VMEM input holding NULL_WAV_VALUE (read-only, DMA'd
               in once; never refilled in-kernel).
    wav_hbm  : (B, NT, 8, TILE_L) HBM (pl.ANY); aliased to out_hbm, never read.
    out_hbm  : (B, NT, 8, TILE_L) HBM (pl.ANY); aliased to the input buffer.
    sems     : (nslots,) DMA semaphores — ring for multi-outstanding copies.
    """
    del wav_hbm  # output is aliased to the input; kept samples move no bytes
    b = pl.program_id(0)
    s = pl.program_id(1)
    base = s * tiles_per_step

    # Kept samples: do nothing at all — zero HBM bytes moved for them.
    @pl.when(drop_ref[b] != 0)
    def _():
        def issue(i, carry):
            slot = lax.rem(i, nslots)
            # Before reusing a slot, wait for the copy previously issued on it
            # (same transfer size, so the wait amount is correct).
            @pl.when(i >= nslots)
            def _():
                pltpu.make_async_copy(
                    const_ref, out_hbm.at[b, base + i - nslots], sems.at[slot]
                ).wait()
            # Contiguous HBM destination: one (8, TILE_L) slab per descriptor.
            pltpu.make_async_copy(
                const_ref, out_hbm.at[b, base + i], sems.at[slot]
            ).start()
            return carry

        lax.fori_loop(0, tiles_per_step, issue, 0)

        # Drain: exactly one copy is still outstanding on each of the nslots
        # slots (nslots == min(_DMA_SLOTS, tiles_per_step)).  All transfers
        # have the same size, so any same-shape descriptor is a valid wait.
        for slot in range(nslots):
            pltpu.make_async_copy(
                const_ref, out_hbm.at[b, base + slot], sems.at[slot]
            ).wait()


def _pick_tile_lanes(lanes: int, cap_lanes: int) -> int:
    """Largest divisor of `lanes` that is a multiple of 128 and <= cap_lanes."""
    units = lanes // _LANE
    cap_units = max(1, min(units, cap_lanes // _LANE))
    for u in range(cap_units, 0, -1):
        if units % u == 0:
            return u * _LANE
    return _LANE


def dropout_nullify_wav(wav, drop_mask, *, max_tile_bytes=_DEFAULT_MAX_TILE_BYTES):
    """out[b] = NULL_WAV_VALUE everywhere if drop_mask[b] else wav[b].

    wav: (B, C, T).  drop_mask: (B,) int.  Per-sample masked path (CFG-style);
    kept samples are untouched (in-place via input/output aliasing).
    """
    B, C, T = wav.shape
    n = C * T
    itemsize = jnp.dtype(wav.dtype).itemsize

    # Lane-dense, sublane-full layout; pad ragged shapes up to a multiple of
    # 8*128 (padding values are irrelevant: dropped samples are overwritten
    # with a uniform constant, kept samples are untouched and sliced back).
    unit = _SUBLANES * _LANE
    n_pad = ((n + unit - 1) // unit) * unit
    lanes_total = n_pad // _SUBLANES

    cap_lanes = max(_LANE, max_tile_bytes // (_SUBLANES * itemsize))
    tile_l = _pick_tile_lanes(lanes_total, cap_lanes)
    num_tiles = lanes_total // tile_l

    # 2-way lane split so both v7x TensorCores get work even for tiny/odd B.
    nsplit = 2 if (num_tiles >= 2 and num_tiles % 2 == 0) else 1
    tiles_per_step = num_tiles // nsplit
    nslots = min(_DMA_SLOTS, tiles_per_step)

    flat = wav.reshape(B, n)
    if n_pad != n:
        # TODO(synk): the ragged path pays one pad copy; kept for compile
        # safety (capped VMEM tile) on v7x's smaller VMEM.
        flat = jnp.pad(flat, ((0, 0), (0, n_pad - n)))
    x = flat.reshape(B, num_tiles, _SUBLANES, tile_l)

    # Read-only constant source tile, DMA'd into VMEM once and kept resident
    # (index_map returns the same block for every grid point).
    const_tile = jnp.full((_SUBLANES, tile_l), NULL_WAV_VALUE, wav.dtype)

    kernel = functools.partial(
        _nullify_kernel, tiles_per_step=tiles_per_step, nslots=nslots)

    out = pl.pallas_call(
        kernel,
        grid=(B, nsplit),
        in_specs=[
            pl.BlockSpec(memory_space=pltpu.MemorySpace.SMEM),        # drop flags
            pl.BlockSpec((_SUBLANES, tile_l), lambda b, s: (0, 0)),   # resident const
            pl.BlockSpec(memory_space=pl.ANY),                        # wav stays in HBM
        ],
        out_specs=pl.BlockSpec(memory_space=pl.ANY),
        out_shape=jax.ShapeDtypeStruct((B, num_tiles, _SUBLANES, tile_l), wav.dtype),
        scratch_shapes=[pltpu.SemaphoreType.DMA((nslots,))],          # DMA ring
        # In-place: the output buffer IS the wav buffer, so untouched samples
        # cost zero HBM traffic (callers must donate — see *_inplace below).
        input_output_aliases={2: 0},
        compiler_params=pltpu.CompilerParams(
            dimension_semantics=("parallel", "parallel"),
        ),
        cost_estimate=pl.CostEstimate(
            flops=0, transcendentals=0,
            bytes_accessed=B * n_pad * itemsize + _SUBLANES * tile_l * itemsize,
        ),
    )(drop_mask.astype(jnp.int32), const_tile, x)

    out = out.reshape(B, n_pad)
    if n_pad != n:
        out = out[:, :n]
    return out.reshape(B, C, T)


# Production entry point: donating the wav buffer lets XLA honor the alias
# without a defensive full-array copy (review item).
dropout_nullify_wav_inplace = jax.jit(
    dropout_nullify_wav, donate_argnums=(0,), static_argnames=("max_tile_bytes",))


def attribute_dropout_audio(wav, lengths, p, key, *, training=True,
                            active_on_eval=False):
    """AttributeDropout.forward analogue for one 'audio' attribute.

    One uniform draw per attribute (NOT per sample); if it is < p the attribute
    is nullified for EVERY sample: wav -> 16385, length -> 0.
    Returns (wav_out, lengths_out, drop_mask).
    """
    # TODO(synk): text-condition dropout (sample.text[cond] = None) and the
    # ConditioningAttributes / deepcopy bookkeeping are pure Python metadata
    # with no tensor equivalent; only the audio wav/length path is kerneled.
    B = wav.shape[0]
    if not training and not active_on_eval:
        return wav, lengths, jnp.zeros((B,), jnp.int32)

    # Analogue of torch.rand(1, generator=self.rng) — one draw per attribute.
    draw = jax.random.uniform(key, (), dtype=jnp.float32)
    drop = draw < p  # scalar decision, uniform over the whole batch

    # Uniform decision => lax.cond: the common kept case does NO work at all
    # (no pallas launch, no HBM traffic); the dropped case is a roofline
    # constant fill.  The masked Pallas kernel is kept for the per-sample
    # (ClassifierFreeGuidanceDropout-style) path.
    wav_out = lax.cond(
        drop,
        lambda w: jnp.full_like(w, NULL_WAV_VALUE),
        lambda w: w,
        wav,
    )
    lengths_out = jnp.where(drop, jnp.zeros_like(lengths), lengths)
    drop_mask = jnp.broadcast_to(drop.astype(jnp.int32), (B,))
    return wav_out, lengths_out, drop_mask


if __name__ == "__main__":
    warnings.filterwarnings("ignore", message=".*donat.*")  # aliasing warnings only

    B, C, T = 2, 4, 2048  # small: batch=2, depth (wav.shape[1])=4, time=2048
    key = jax.random.PRNGKey(0)
    k_wav, k_drop = jax.random.split(key)

    wav = jax.random.normal(k_wav, (B, C, T), dtype=jnp.float32)
    lengths = jnp.full((B,), T, dtype=jnp.int32)

    mixed = jnp.array([1, 0], dtype=jnp.int32)
    ref_mixed = jnp.where(mixed[:, None, None] == 1,
                          jnp.full_like(wav, NULL_WAV_VALUE), wav)

    # 1) Default (big tile) config, donated buffer — per-sample masked path.
    out1 = dropout_nullify_wav_inplace(jnp.copy(wav), mixed)
    jax.block_until_ready(out1)
    assert jnp.array_equal(out1, ref_mixed), "mismatch (default tile config)"

    # 2) Small tile cap: exercises multi-tile, the 2-way lane split, and the
    #    4-deep multi-outstanding DMA ring.
    out2 = dropout_nullify_wav_inplace(jnp.copy(wav), mixed, max_tile_bytes=4 * 1024)
    jax.block_until_ready(out2)
    assert jnp.array_equal(out2, ref_mixed), "mismatch (small tile / DMA ring)"

    # 3) Ragged shape (C*T not a multiple of 8*128): padded fallback path.
    wav_r = jax.random.normal(k_wav, (B, 3, 100), dtype=jnp.float32)
    ref_r = jnp.where(mixed[:, None, None] == 1,
                      jnp.full_like(wav_r, NULL_WAV_VALUE), wav_r)
    out3 = dropout_nullify_wav_inplace(jnp.copy(wav_r), mixed)
    jax.block_until_ready(out3)
    assert jnp.array_equal(out3, ref_r), "mismatch (ragged / padded path)"

    # 4) AttributeDropout forward analogue (one draw gates the whole batch).
    wav_out, lengths_out, drop_mask = attribute_dropout_audio(
        wav, lengths, p=0.5, key=k_drop, training=True)
    jax.block_until_ready(wav_out)
    jax.block_until_ready(lengths_out)
    ref2 = jnp.where(drop_mask[:, None, None] == 1,
                     jnp.full_like(wav, NULL_WAV_VALUE), wav)
    assert jnp.array_equal(wav_out, ref2), "mismatch (attribute dropout)"
    assert bool(jnp.all(jnp.where(drop_mask == 1, lengths_out == 0,
                                  lengths_out == lengths)))

    print("KERNEL_OK")
</pallas_src>

<mosaic_0001>
module attributes {stable_mosaic.version = 11 : i64} {
  func.func @_nullify_kernel(%arg0: i32, %arg1: i32, %arg2: memref<2xi32, #tpu.memory_space<smem>>, %arg3: memref<8x1024xf32, #tpu.memory_space<vmem>>, %arg4: memref<2x1x8x1024xf32, #tpu.memory_space<any>>, %arg5: memref<2x1x8x1024xf32, #tpu.memory_space<any>>, %arg6: memref<1x!tpu.dma_semaphore, #tpu.memory_space<semaphore_mem>>) attributes {dimension_semantics = [#tpu.dimension_semantics<parallel>, #tpu.dimension_semantics<parallel>], iteration_bounds = array<i64: 2, 1>, scalar_prefetch = 0 : i64, scratch_operands = 1 : i64, tpu.core_type = #tpu.core_type<tc>, window_params = [{transform_indices = @transform_0, window_bounds = array<i64: 2>}, {pipeline_mode = #tpu.pipeline_mode<synchronous>, transform_indices = @transform_1, window_bounds = array<i64: 8, 1024>}, {}, {}]} {
    %c1_i32 = arith.constant 1 : i32
    %0 = arith.muli %arg1, %c1_i32 : i32
    %1 = arith.index_cast %arg0 : i32 to index
    %2 = memref.load %arg2[%1] : memref<2xi32, #tpu.memory_space<smem>>
    %c0_i32 = arith.constant 0 : i32
    %3 = arith.cmpi ne, %2, %c0_i32 : i32
    %4 = arith.extui %3 : i1 to i32
    %c0_i32_0 = arith.constant 0 : i32
    %5 = arith.cmpi ne, %4, %c0_i32_0 : i32
    scf.if %5 {
      %c0_i32_1 = arith.constant 0 : i32
      %c1_i32_2 = arith.constant 1 : i32
      %6 = arith.remsi %c0_i32_1, %c1_i32_2 : i32
      %c1_i32_3 = arith.constant 1 : i32
      %7 = arith.cmpi sge, %c0_i32_1, %c1_i32_3 : i32
      %8 = arith.extui %7 : i1 to i32
      %c0_i32_4 = arith.constant 0 : i32
      %9 = arith.cmpi ne, %8, %c0_i32_4 : i32
      scf.if %9 {
        %20 = arith.addi %0, %c0_i32_1 : i32
        %c1_i32_12 = arith.constant 1 : i32
        %21 = arith.subi %20, %c1_i32_12 : i32
        %c0_i32_13 = arith.constant 0 : i32
        %c0_i32_14 = arith.constant 0 : i32
        %22 = tpu.memref_slice %arg5[%arg0, %21, %c0_i32_13, %c0_i32_14] : memref<2x1x8x1024xf32, #tpu.memory_space<any>> -> memref<1x1x8x1024xf32, #tpu.memory_space<any>>
        %23 = tpu.memref_squeeze %22 : memref<1x1x8x1024xf32, #tpu.memory_space<any>> -> memref<8x1024xf32, #tpu.memory_space<any>>
        %24 = tpu.memref_slice %arg6[%6] : memref<1x!tpu.dma_semaphore, #tpu.memory_space<semaphore_mem>> -> memref<1x!tpu.dma_semaphore, #tpu.memory_space<semaphore_mem>>
        %25 = tpu.memref_squeeze %24 : memref<1x!tpu.dma_semaphore, #tpu.memory_space<semaphore_mem>> -> memref<!tpu.dma_semaphore, #tpu.memory_space<semaphore_mem>>
        tpu.wait_dma2 semaphore(%25 : memref<!tpu.dma_semaphore, #tpu.memory_space<semaphore_mem>>) src(%arg3 : memref<8x1024xf32, #tpu.memory_space<vmem>>) dst(%23 : memref<8x1024xf32, #tpu.memory_space<any>>)
      } else {
      }
      %10 = arith.addi %0, %c0_i32_1 : i32
      %c0_i32_5 = arith.constant 0 : i32
      %c0_i32_6 = arith.constant 0 : i32
      %11 = tpu.memref_slice %arg5[%arg0, %10, %c0_i32_5, %c0_i32_6] : memref<2x1x8x1024xf32, #tpu.memory_space<any>> -> memref<1x1x8x1024xf32, #tpu.memory_space<any>>
      %12 = tpu.memref_squeeze %11 : memref<1x1x8x1024xf32, #tpu.memory_space<any>> -> memref<8x1024xf32, #tpu.memory_space<any>>
      %13 = tpu.memref_slice %arg6[%6] : memref<1x!tpu.dma_semaphore, #tpu.memory_space<semaphore_mem>> -> memref<1x!tpu.dma_semaphore, #tpu.memory_space<semaphore_mem>>
      %14 = tpu.memref_squeeze %13 : memref<1x!tpu.dma_semaphore, #tpu.memory_space<semaphore_mem>> -> memref<!tpu.dma_semaphore, #tpu.memory_space<semaphore_mem>>
      tpu.enqueue_dma source(%arg3 : memref<8x1024xf32, #tpu.memory_space<vmem>>) target(%12 : memref<8x1024xf32, #tpu.memory_space<any>>) target_semaphore(%14 : memref<!tpu.dma_semaphore, #tpu.memory_space<semaphore_mem>>)
      %c1_i32_7 = arith.constant 1 : i32
      %c0_i32_8 = arith.constant 0 : i32
      %15 = arith.addi %0, %c0_i32_8 : i32
      %c0_i32_9 = arith.constant 0 : i32
      %c0_i32_10 = arith.constant 0 : i32
      %c0_i32_11 = arith.constant 0 : i32
      %16 = tpu.memref_slice %arg5[%arg0, %15, %c0_i32_10, %c0_i32_11] : memref<2x1x8x1024xf32, #tpu.memory_space<any>> -> memref<1x1x8x1024xf32, #tpu.memory_space<any>>
      %17 = tpu.memref_squeeze %16 : memref<1x1x8x1024xf32, #tpu.memory_space<any>> -> memref<8x1024xf32, #tpu.memory_space<any>>
      %18 = tpu.memref_slice %arg6[%c0_i32_9] : memref<1x!tpu.dma_semaphore, #tpu.memory_space<semaphore_mem>> -> memref<1x!tpu.dma_semaphore, #tpu.memory_space<semaphore_mem>>
      %19 = tpu.memref_squeeze %18 : memref<1x!tpu.dma_semaphore, #tpu.memory_space<semaphore_mem>> -> memref<!tpu.dma_semaphore, #tpu.memory_space<semaphore_mem>>
      tpu.wait_dma2 semaphore(%19 : memref<!tpu.dma_semaphore, #tpu.memory_space<semaphore_mem>>) src(%arg3 : memref<8x1024xf32, #tpu.memory_space<vmem>>) dst(%17 : memref<8x1024xf32, #tpu.memory_space<any>>)
    } else {
    }
    return
  }
  func.func @transform_0(%arg0: i32, %arg1: i32) -> i32 {
    %c0_i32 = arith.constant 0 : i32
    %c0_i32_0 = arith.constant 0 : i32
    return %c0_i32 : i32
  }
  func.func @transform_1(%arg0: i32, %arg1: i32) -> (i32, i32) {
    %c0_i32 = arith.constant 0 : i32
    %c0_i32_0 = arith.constant 0 : i32
    %c0_i32_1 = arith.constant 0 : i32
    return %c0_i32, %c0_i32_0 : i32, i32
  }
}

</mosaic_0001>

<bundles_post_ra>
// kernel: dropout_nullify_wav.1
= control target key start
LH: loop header
LB: loop body
LE: loop exit
PB: predicated region body
PF: predicated region fallthrough
CT: control target
= control target key end

     0   :  { %8 = vsyncpa [#allocation4], 0  ;;  %s321_s12 = smov 0   ;;  %s323_s13 = smov 0   ;;  %s395_s0 = inlined_call_operand.vmem [shape: s32[2], index: 0, kind: input, shape index: {}]   ;;  %s396_s1 = inlined_call_operand.vmem [shape: f32[8,1024], index: 1, kind: input, shape index: {}]   ;;  %s397_s2 = inlined_call_operand.vmem [shape: f32[2,1,8,1024], index: 2, kind: input, shape index: {}, may-alias: {2,3}]   ;;  %s398_s3 = inlined_call_operand.vmem [shape: f32[2,1,8,1024], index: 3, kind: output, shape index: {}, may-alias: {2,3}]  }
   0x1   :  { %s325_s14 = smov 0  }
   0x2 LB: > { %s207_s2 = sadd.s32 4294967295, %s298_s14   ;;  %s23_s15 = sadd.s32 1, %s294_s13  ;;  %s298_s14 = sphi %s325_s14, %s14_s14   ;;  %s294_s13 = sphi %s323_s13, %s401_s13   ;;  %s290_s12 = sphi %s321_s12, %s400_s12  }
   0x3   : > { %p25_p0 = scmp.ge.s32.totalorder %s23_s15, 2  ;;  %p209_p1 = scmp.lt.s32.totalorder %s298_s14, 1 }
   0x4   : > { %p227_p2 = scmp.ge.s32.totalorder %s298_s14, 1  ;;  %p342_p3 = scmp.eq.s32.totalorder %s207_s2, 0 }
   0x5   : > { %s403_s15 = smov (%p25_p0, %s23_s15), 0  ;;  %s67_s19 = sshll.u32 %s395_s0, 4  ;;  %s68_s19 = int_to_ptr.vmem [resolvable:$true] %s67_s19 }
   0x6   : > { %p224_p4 = pnand %p342_p3, %p227_p2  ;;  %s255_s20 = scalar_lea.vmem %s68_s19, 16 }
   0x7   : > { %p256_p5 = scmp.ne.s32.totalorder %s68_s19, %s255_s20  ;;  %p263_p9 = scmp.lt.s32.totalorder %s68_s19, %s68_s19 }
   0x8   : > { %p257_p6 = pneg %p224_p4  ;;  %p264_p10 = scmp.lt.s32.totalorder %s255_s20, %s255_s20 }
   0xa   : > { %p258_p7 = pnand %p257_p6, %p256_p5  ;;  %p265_p11 = por %p264_p10, %p263_p9 }
   0xc   : > { %p259_p8 = pneg %p258_p7 }
   0xe   : > { %p266_p12 = pnand %p265_p11, %p259_p8 }
  0x10   : > { %269 = shalt.err (!%p266_p12)
}
  0x11   : > { %s300_s21 = smov [#allocation3]   ;;  %81 = sbr.rel (%p209_p1) target bundleno = 45 (0x2d), region = 28 }
  0x12   : > { %226 = dma.vmem_to_smem (!%p224_p4), %s68_s19, 16, %s300_s21, [#allocation4]  }
  0x18   : > { %283 = dma.done.wait (%p342_p3), [#allocation4], 16  }
  0x19   : > { %285 = vsyncadd (%p342_p3), [#allocation4], 4294967280 }
  0x1a   : > { %87 = sfence }
  0x1b   : > { %s92_s22 = sld [smem:[#allocation3 + %s290_s12]] }
  0x21   : > { %p214_p13 = scmp.eq.s32.totalorder %s92_s22, 0 }
  0x22   : > { %s218_s23 = sshll.u32 (!%p214_p13), %s290_s12, 6  ;;  %v134_v0 = vld [vmem:[%s396_s1] sm:$0xff] (!%p214_p13)  ;;  %v136_v1 = vld [vmem:[%s396_s1 + $0x8] sm:$0xff] (!%p214_p13)  ;;  %v138_v2 = vld [vmem:[%s396_s1 + $0x10] sm:$0xff] (!%p214_p13) }
  0x23   : > { %96 = sbr.rel (%p214_p13) target bundleno = 45 (0x2d), region = 36  ;;  %s101_s5 = scalar_lea.vmem (!%p214_p13), %s398_s3, %s218_s23  ;;  %v140_v3 = vld [vmem:[%s396_s1 + $0x18] sm:$0xff] (!%p214_p13)  ;;  %v142_v4 = vld [vmem:[%s396_s1 + $0x20] sm:$0xff] (!%p214_p13)  ;;  %v144_v5 = vld [vmem:[%s396_s1 + $0x28] sm:$0xff] (!%p214_p13) }
  0x24   : > { %135 = vst [vmem:[%s101_s5] sm:$0xff] (!%p214_p13), %v134_v0  ;;  %137 = vst [vmem:[%s101_s5 + $0x8] sm:$0xff] (!%p214_p13), %v136_v1  ;;  %v146_v6 = vld [vmem:[%s396_s1 + $0x30] sm:$0xff] (!%p214_p13)  ;;  %v148_v7 = vld [vmem:[%s396_s1 + $0x38] sm:$0xff] (!%p214_p13) }
  0x25   : > { %139 = vst [vmem:[%s101_s5 + $0x10] sm:$0xff] (!%p214_p13), %v138_v2  ;;  %141 = vst [vmem:[%s101_s5 + $0x18] sm:$0xff] (!%p214_p13), %v140_v3 }
  0x26   : > { %143 = vst [vmem:[%s101_s5 + $0x20] sm:$0xff] (!%p214_p13), %v142_v4  ;;  %145 = vst [vmem:[%s101_s5 + $0x28] sm:$0xff] (!%p214_p13), %v144_v5 }
  0x27   : > { %147 = vst [vmem:[%s101_s5 + $0x30] sm:$0xff] (!%p214_p13), %v146_v6  ;;  %149 = vst [vmem:[%s101_s5 + $0x38] sm:$0xff] (!%p214_p13), %v148_v7 }
  0x2a   : > { %157 = vsyncadd [#allocation2], 1024 }
  0x2b   : > { %286 = dma.done.wait [#allocation2], 1024 }
  0x2c   : > { %287 = vsyncadd [#allocation2], 4294966272 }
  0x2d PF: > { %s14_s14 = sadd.s32 1, %s298_s14   ;;  %s400_s12 = smov %s294_s13 }
  0x2e   : > { %p11_p0 = scmp.ge.s32.totalorder %s14_s14, 3   ;;  %s401_s13 = smov %s403_s15 }
  0x30   :  { %13 = sbr.rel (!%p11_p0) target bundleno = 2 (0x2), region = 91 }
  0x37   :  { %162 = vsyncpa [#allocation4], 1 }
  0x38   :  { %164 = vsyncpa [#allocation4 + $0x1], 1 }
  0x39   :  { %165 = vsyncmov [#allocation2] }
  0x3c   :  { %s166_s18 = vpop.sfrf %165 }
  0x3d   :  { %p217_p1 = scmp.ne.s32.totalorder %s166_s18, 0 }
  0x3f   :  { %170 = shalt.err (%p217_p1)  }

</bundles_post_ra>
